<compile_context>
chip_gen: v5e
topology: v5e:2x2
jax: 0.10.0
libtpu: 0.0.40
codegen_flags: <defaults>
</compile_context>

<pallas_src>
import functools

import jax
import jax.numpy as jnp
from jax.experimental import pallas as pl
from jax.experimental.pallas import tpu as pltpu


def _vmem_capacity_bytes():
    """Physical VMEM of the attached TPU generation (conservative fallback)."""
    try:
        return int(pltpu.get_tpu_info().vmem_capacity_bytes)
    except Exception:
        return 64 << 20  # v7x physical size: safe lower bound everywhere


def _pick_tile_t(T, D, Cs_pad, itemsize, budget_bytes, single_batch):
    """Largest lane-multiple-of-128 time tile whose pipelined footprint fits."""
    if T <= 128:
        return T
    cap = min(1024, (T // 128) * 128)  # never exceed T (no oversized blocks)
    # Double-buffered VMEM footprint:
    #   x tile          : 2 * tT * D * itemsize
    #   strong out tile : 2 * Cs_pad * tT * itemsize
    #   ws weights      : 2 * Cs_pad * D * 4   (grid-invariant, still 2 buffers)
    #   bias / weak out : negligible
    fixed = 2 * Cs_pad * D * 4 + 2 * Cs_pad * 4 + 2 * D * 4
    per_t = 2 * D * itemsize + 2 * Cs_pad * itemsize
    tt = 128
    for cand in range(cap, 127, -128):
        if fixed + cand * per_t <= budget_bytes:
            tt = cand
            break
    if single_batch and T >= 256:
        # B == 1 cannot feed two TensorCores through the batch axis: make sure
        # there are >= 2 time tiles so the chunked-parallel split can kick in.
        half = (T // 2) // 128 * 128
        if half >= 128:
            tt = min(tt, half)
    return tt


@functools.partial(jax.jit, static_argnames=("seq_len",))
def wrapper_forward(x, ws, bs, ww, bw, *, seq_len):
    """Forward pass of Wrapper (seq_model=None, head_type='linear').

    x  : (B, T, D) float32  -- base-model output (base model = Identity here)
    ws : (Cs, D), bs : (Cs,)   strong head (PyTorch nn.Linear layout [out, in])
    ww : (Cw, D), bw : (Cw,)   weak head
    returns (strong_T, weak): strong_T (B, Cs, T), weak (B, Cw)
    """
    B, T, D = x.shape
    Cs = ws.shape[0]
    Cw = ww.shape[0]
    assert T == seq_len, (
        "TODO(synk): adaptive_avg_pool1d / interpolate resize branch not implemented"
    )

    itemsize = jnp.dtype(x.dtype).itemsize
    Cs_pad = max(8, -(-Cs // 8) * 8)           # pad strong classes to sublane multiple

    vmem_phys = _vmem_capacity_bytes()
    budget = int(0.40 * vmem_phys)             # headroom for semaphores / internal scratch
    vmem_limit = min(int(0.75 * vmem_phys), 96 << 20)

    tT = _pick_tile_t(T, D, Cs_pad, itemsize, budget, single_batch=(B == 1))
    nT = (T + tT - 1) // tT                    # number of time tiles (cdiv)
    n_chunk = 2 if (B == 1 and nT >= 2 and nT % 2 == 0) else 1
    npc = nT // n_chunk                        # time tiles per parallel chunk
    needs_mask = (T % tT) != 0
    inv_t = 1.0 / T                            # static; baked into the epilogue

    # Pad the strong head so the hot strong-tile store path is unmasked.
    ws_pad = jnp.zeros((Cs_pad, D), ws.dtype).at[:Cs].set(ws)
    bs_pad = jnp.zeros((Cs_pad, 1), bs.dtype).at[:Cs, 0].set(bs)

    def kernel(x_ref, ws_ref, bs_ref, strong_ref, wsum_ref):
        # x_ref      : (1, tT, D)        VMEM
        # ws_ref     : (Cs_pad, D)       strong weight (grid-invariant)
        # bs_ref     : (Cs_pad, 1)
        # strong_ref : (1, Cs_pad, tT)   output, time on lanes -> lane-dense store
        # wsum_ref   : (1, 1, 1, D) f32  per-(batch, chunk) weak partial sum
        c = pl.program_id(1)
        t = pl.program_id(2)
        x_blk = x_ref[0]                                           # (tT, D)

        # Strong head, produced already transposed: (Cs_pad, tT) = ws . x^T
        s_t = jax.lax.dot_general(
            ws_ref[...], x_blk, (((1,), (1,)), ((), ())),
            preferred_element_type=jnp.float32,
        ) + bs_ref[...]                                            # (Cs_pad, tT)
        strong_ref[0] = s_t.astype(strong_ref.dtype)

        # Weak head: running f32 sum over time, accumulated directly in the
        # resident output block (same block index across the inner axis).
        @pl.when(t == 0)
        def _():
            wsum_ref[...] = jnp.zeros_like(wsum_ref)

        xf = x_blk.astype(jnp.float32)
        if needs_mask:
            gt = c * npc + t                                       # global tile index
            valid = T - gt * tT
            row_ids = jax.lax.broadcasted_iota(jnp.int32, (tT, 1), 0)
            xf = jnp.where(row_ids < valid, xf, 0.0)
        wsum_ref[...] += jnp.sum(xf, axis=0, keepdims=True)[None, None]

    strong_pad, wsum = pl.pallas_call(
        kernel,
        out_shape=(
            jax.ShapeDtypeStruct((B, Cs_pad, T), x.dtype),
            jax.ShapeDtypeStruct((B, n_chunk, 1, D), jnp.float32),
        ),
        grid_spec=pltpu.PrefetchScalarGridSpec(
            num_scalar_prefetch=0,
            grid=(B, n_chunk, npc),
            in_specs=[
                pl.BlockSpec((1, tT, D), lambda b, c, t: (b, c * npc + t, 0)),
                pl.BlockSpec((Cs_pad, D), lambda b, c, t: (0, 0)),
                pl.BlockSpec((Cs_pad, 1), lambda b, c, t: (0, 0)),
            ],
            out_specs=[
                pl.BlockSpec((1, Cs_pad, tT), lambda b, c, t: (b, 0, c * npc + t)),
                pl.BlockSpec((1, 1, 1, D), lambda b, c, t: (b, c, 0, 0)),
            ],
        ),
        compiler_params=pltpu.CompilerParams(
            dimension_semantics=("parallel", "parallel", "arbitrary"),
            vmem_limit_bytes=vmem_limit,
        ),
    )(x, ws_pad, bs_pad)

    strong = strong_pad[:, :Cs, :]
    # Tiny (B,D)x(D,Cw) weak matmul: stays in f32 and fuses under jit.
    x_mean = jnp.sum(wsum, axis=(1, 2)) * inv_t                    # (B, D) f32
    weak = x_mean @ ww.astype(jnp.float32).T + bw.astype(jnp.float32)
    return strong, weak.astype(x.dtype)


def _reference(x, ws, bs, ww, bw):
    strong = jnp.einsum("btd,cd->bct", x, ws) + bs[None, :, None]   # (B, Cs, T)
    weak = x.mean(axis=1) @ ww.T + bw                               # (B, Cw)
    return strong, weak


def _run_case(key, B, T, D, Cs, Cw):
    kx, kws, kbs, kww, kbw = jax.random.split(key, 5)
    x = jax.random.normal(kx, (B, T, D), dtype=jnp.float32)
    bound = 1.0 / (D ** 0.5)
    ws = jax.random.uniform(kws, (Cs, D), jnp.float32, -bound, bound)
    bs = jax.random.uniform(kbs, (Cs,), jnp.float32, -bound, bound)
    ww = jax.random.uniform(kww, (Cw, D), jnp.float32, -bound, bound)
    bw = jax.random.uniform(kbw, (Cw,), jnp.float32, -bound, bound)

    strong_t, weak = wrapper_forward(x, ws, bs, ww, bw, seq_len=T)
    jax.block_until_ready((strong_t, weak))

    strong_ref, weak_ref = _reference(x, ws, bs, ww, bw)
    assert strong_t.shape == (B, Cs, T)
    assert weak.shape == (B, Cw)
    assert jnp.allclose(strong_t, strong_ref, atol=1e-4, rtol=1e-4)
    assert jnp.allclose(weak, weak_ref, atol=1e-4, rtol=1e-4)


if __name__ == "__main__":
    key = jax.random.PRNGKey(0)
    k1, k2, k3 = jax.random.split(key, 3)

    # Small config consistent with the module defaults scaled down
    # (single T tile: tT == T == 8; Cs padded 12 -> 16).
    _run_case(k1, B=2, T=8, D=32, Cs=12, Cw=12)

    # T not divisible by the tile: two 128+ tiles with a masked 64-row tail
    # (exercises the cdiv grid + weak-sum tail masking path).
    _run_case(k2, B=2, T=320, D=128, Cs=16, Cw=10)

    # B == 1: time tiles split into 2 parallel chunks with per-chunk weak
    # partial sums (v7x dual-TensorCore path; neutral on v5e/v6e).
    _run_case(k3, B=1, T=512, D=128, Cs=12, Cw=7)

    print("KERNEL_OK")
</pallas_src>

<mosaic_0001>
module attributes {stable_mosaic.version = 11 : i64} {
  func.func @kernel(%arg0: i32, %arg1: i32, %arg2: i32, %arg3: memref<1x8x32xf32, #tpu.memory_space<vmem>>, %arg4: memref<16x32xf32, #tpu.memory_space<vmem>>, %arg5: memref<16x1xf32, #tpu.memory_space<vmem>>, %arg6: memref<1x16x8xf32, #tpu.memory_space<vmem>>, %arg7: memref<1x1x1x32xf32, #tpu.memory_space<vmem>>) attributes {dimension_semantics = [#tpu.dimension_semantics<parallel>, #tpu.dimension_semantics<parallel>, #tpu.dimension_semantics<arbitrary>], iteration_bounds = array<i64: 2, 1, 1>, scalar_prefetch = 0 : i64, scratch_operands = 0 : i64, tpu.core_type = #tpu.core_type<tc>, window_params = [{transform_indices = @transform_0, window_bounds = array<i64: 1, 8, 32>}, {pipeline_mode = #tpu.pipeline_mode<synchronous>, transform_indices = @transform_1, window_bounds = array<i64: 16, 32>}, {pipeline_mode = #tpu.pipeline_mode<synchronous>, transform_indices = @transform_2, window_bounds = array<i64: 16, 1>}, {transform_indices = @transform_3, window_bounds = array<i64: 1, 16, 8>}, {transform_indices = @transform_4, window_bounds = array<i64: 1, 1, 1, 32>}]} {
    %c0 = arith.constant 0 : index
    %c0_0 = arith.constant 0 : index
    %c0_1 = arith.constant 0 : index
    %0 = vector.load %arg3[%c0, %c0_0, %c0_1] : memref<1x8x32xf32, #tpu.memory_space<vmem>>, vector<1x8x32xf32>
    %1 = vector.shape_cast %0 : vector<1x8x32xf32> to vector<8x32xf32>
    %c0_2 = arith.constant 0 : index
    %c0_3 = arith.constant 0 : index
    %2 = vector.load %arg4[%c0_2, %c0_3] : memref<16x32xf32, #tpu.memory_space<vmem>>, vector<16x32xf32>
    %cst = arith.constant dense<0.000000e+00> : vector<16x8xf32>
    %3 = tpu.matmul %2, %1, %cst {dimension_numbers = #tpu.dot_dimension_numbers<[1], [1], [0], [0], [0, 0, 1, 0], [], []>} : vector<16x32xf32>, vector<8x32xf32>, vector<16x8xf32> -> vector<16x8xf32>
    %c0_4 = arith.constant 0 : index
    %c0_5 = arith.constant 0 : index
    %4 = vector.load %arg5[%c0_4, %c0_5] : memref<16x1xf32, #tpu.memory_space<vmem>>, vector<16x1xf32>
    %5 = vector.broadcast %4 : vector<16x1xf32> to vector<16x8xf32>
    %6 = arith.addf %3, %5 : vector<16x8xf32>
    %c0_6 = arith.constant 0 : index
    %c0_7 = arith.constant 0 : index
    %c0_8 = arith.constant 0 : index
    %7 = vector.load %arg6[%c0_6, %c0_7, %c0_8] : memref<1x16x8xf32, #tpu.memory_space<vmem>>, vector<1x16x8xf32>
    %8 = vector.shape_cast %7 : vector<1x16x8xf32> to vector<16x8xf32>
    %9 = vector.shape_cast %6 : vector<16x8xf32> to vector<1x16x8xf32>
    tpu.vector_store %arg6[%c0_6, %c0_7, %c0_8], %9 {strides = array<i32>} : memref<1x16x8xf32, #tpu.memory_space<vmem>>, vector<1x16x8xf32>,
    %c0_i32 = arith.constant 0 : i32
    %10 = arith.cmpi eq, %arg2, %c0_i32 : i32
    %11 = arith.extui %10 : i1 to i32
    %c0_i32_9 = arith.constant 0 : i32
    %12 = arith.cmpi ne, %11, %c0_i32_9 : i32
    scf.if %12 {
      %cst_19 = arith.constant 0.000000e+00 : f32
      %19 = vector.broadcast %cst_19 : f32 to vector<1x1x1x32xf32>
      %c0_20 = arith.constant 0 : index
      %c0_21 = arith.constant 0 : index
      %c0_22 = arith.constant 0 : index
      %c0_23 = arith.constant 0 : index
      %20 = vector.load %arg7[%c0_20, %c0_21, %c0_22, %c0_23] : memref<1x1x1x32xf32, #tpu.memory_space<vmem>>, vector<1x1x1x32xf32>
      tpu.vector_store %arg7[%c0_20, %c0_21, %c0_22, %c0_23], %19 {strides = array<i32>} : memref<1x1x1x32xf32, #tpu.memory_space<vmem>>, vector<1x1x1x32xf32>,
    } else {
    }
    %c0_10 = arith.constant 0 : index
    %c0_11 = arith.constant 0 : index
    %c0_12 = arith.constant 0 : index
    %c0_13 = arith.constant 0 : index
    %13 = vector.load %arg7[%c0_10, %c0_11, %c0_12, %c0_13] : memref<1x1x1x32xf32, #tpu.memory_space<vmem>>, vector<1x1x1x32xf32>
    %cst_14 = arith.constant dense<0.000000e+00> : vector<32xf32>
    %14 = vector.multi_reduction <add>, %1, %cst_14 [0] : vector<8x32xf32> to vector<32xf32>
    %15 = vector.shape_cast %14 : vector<32xf32> to vector<1x32xf32>
    %16 = vector.shape_cast %15 : vector<1x32xf32> to vector<1x1x1x32xf32>
    %17 = arith.addf %13, %16 : vector<1x1x1x32xf32>
    %c0_15 = arith.constant 0 : index
    %c0_16 = arith.constant 0 : index
    %c0_17 = arith.constant 0 : index
    %c0_18 = arith.constant 0 : index
    %18 = vector.load %arg7[%c0_15, %c0_16, %c0_17, %c0_18] : memref<1x1x1x32xf32, #tpu.memory_space<vmem>>, vector<1x1x1x32xf32>
    tpu.vector_store %arg7[%c0_15, %c0_16, %c0_17, %c0_18], %17 {strides = array<i32>} : memref<1x1x1x32xf32, #tpu.memory_space<vmem>>, vector<1x1x1x32xf32>,
    return
  }
  func.func @transform_0(%arg0: i32, %arg1: i32, %arg2: i32) -> (i32, i32, i32) {
    %c1_i32 = arith.constant 1 : i32
    %0 = arith.muli %arg1, %c1_i32 : i32
    %1 = arith.addi %0, %arg2 : i32
    %c0_i32 = arith.constant 0 : i32
    %c0_i32_0 = arith.constant 0 : i32
    return %arg0, %1, %c0_i32 : i32, i32, i32
  }
  func.func @transform_1(%arg0: i32, %arg1: i32, %arg2: i32) -> (i32, i32) {
    %c0_i32 = arith.constant 0 : i32
    %c0_i32_0 = arith.constant 0 : i32
    %c0_i32_1 = arith.constant 0 : i32
    return %c0_i32, %c0_i32_0 : i32, i32
  }
  func.func @transform_2(%arg0: i32, %arg1: i32, %arg2: i32) -> (i32, i32) {
    %c0_i32 = arith.constant 0 : i32
    %c0_i32_0 = arith.constant 0 : i32
    %c0_i32_1 = arith.constant 0 : i32
    return %c0_i32, %c0_i32_0 : i32, i32
  }
  func.func @transform_3(%arg0: i32, %arg1: i32, %arg2: i32) -> (i32, i32, i32) {
    %c1_i32 = arith.constant 1 : i32
    %0 = arith.muli %arg1, %c1_i32 : i32
    %1 = arith.addi %0, %arg2 : i32
    %c0_i32 = arith.constant 0 : i32
    %c0_i32_0 = arith.constant 0 : i32
    return %arg0, %c0_i32, %1 : i32, i32, i32
  }
  func.func @transform_4(%arg0: i32, %arg1: i32, %arg2: i32) -> (i32, i32, i32, i32) {
    %c0_i32 = arith.constant 0 : i32
    %c0_i32_0 = arith.constant 0 : i32
    %c0_i32_1 = arith.constant 0 : i32
    return %arg0, %arg1, %c0_i32, %c0_i32_0 : i32, i32, i32, i32
  }
}

</mosaic_0001>

<bundles_post_ra>
// kernel: wrapper_forward.1
= control target key start
LH: loop header
LB: loop body
LE: loop exit
PB: predicated region body
PF: predicated region fallthrough
CT: control target
= control target key end

     0   :  { %s545_s15 = smov 0   ;;  %s547_s16 = smov 0   ;;  %s600_s0 = inlined_call_operand.vmem [shape: f32[2,8,32], index: 0, kind: input, shape index: {}]   ;;  %s601_s1 = inlined_call_operand.vmem [shape: f32[16,32], index: 1, kind: input, shape index: {}]   ;;  %s602_s2 = inlined_call_operand.vmem [shape: f32[16,1], index: 2, kind: input, shape index: {}]   ;;  %s603_s3 = inlined_call_operand.vmem [shape: f32[2,16,8], index: 3, kind: output, shape index: {0}]   ;;  %s604_s4 = inlined_call_operand.vmem [shape: f32[2,1,1,32], index: 4, kind: output, shape index: {1}]  }
   0x1   :  { %s549_s17 = smov 0  }
   0x2 LB: > { %s34_s18 = sadd.s32 1, %s512_s16  ;;  %p456_p0 = scmp.ge.s32.totalorder %s516_s17, 1  ;;  %s516_s17 = sphi %s549_s17, %s15_s17   ;;  %s512_s16 = sphi %s547_s16, %s606_s16   ;;  %s508_s15 = sphi %s545_s15, %s605_s15  }
   0x3   : > { %p36_p1 = scmp.ge.s32.totalorder %s34_s18, 2  ;;  %p198_p2 = scmp.lt.s32.totalorder %s516_s17, 3 }
   0x5   : > { %s608_s18 = smov (%p36_p1, %s34_s18), 0  ;;  %p199_p3 = pnand %p456_p0, %p198_p2 }
   0x6   : > { %p238_p4 = scmp.lt.s32.totalorder (!%p199_p3), %s508_s15, 1 }
   0x7   : > { %202 = sbr.rel (%p199_p3) target bundleno = 149 (0x95), region = 32 }
   0xc   : > { %v265_v0 = vld [vmem:[%s602_s2] sm:$0xff]  ;;  %v518_v1 = vmov 0   ;;  %s610_s15 = smov (!%p238_p4, %s508_s15), 1  ;;  %vm317_vm0 = vcmask 253952   ;;  %vm277_vm1 = vcmask 261120   ;;  %v519_v2 = vmov 0.0  }
   0xd   : > { %493 = vset.pattern.permute.xlu0 %v518_v1  ;;  %s457_s21 = sshll.u32 %s610_s15, 3  ;;  %s261_s24 = scalar_lea.vmem %s604_s4, %s610_s15  ;;  %v263_v5 = vld [vmem:[%s601_s1] sm:$0xff]  ;;  %v264_v6 = vld [vmem:[%s601_s1 + $0x8] sm:$0xff]  ;;  %vm310_vm2 = vcmask 64512  }
   0xe   : > { %269 = vperm.xlu0 %493, %v265_v0   ;;  %s244_s27 = scalar_lea.vmem %s600_s0, %s457_s21  ;;  %318 = vst.msk [vmem:[%s261_s24] sm:$0x1] %vm317_vm0, %v519_v2  ;;  %v266_v8 = vld [vmem:[%s602_s2 + $0x8] sm:$0xff]  ;;  %s465_s8 = sshll.u32 %s610_s15, 4 }
   0xf   : > { %v262_v3 = vld [vmem:[%s244_s27] sm:$0xff]  ;;  %s254_s11 = scalar_lea.vmem %s603_s3, %s465_s8 }
  0x10   : > { %460 = vmatpush.xpose.msk.msra.mxu0 %vm277_vm1, %v262_v3  ;;  %v320_v4 = vsel %vm277_vm1, %v262_v3, 0.0  ;;  %466 = vmatpush.xpose.msk.msra.mxu1 %vm277_vm1, %v262_v3 }
  0x11   : > { %v321_v7 = vrot.slane %v320_v4, 4 }
  0x13   : > { %v322_v9 = vadd.f32 %v321_v7, %v320_v4  ;;  %461 = vmatmul.msk.f32.vlgmr.msra.gmra.mxu0 %vm277_vm1, %v263_v5  ;;  %462 = vmatmul.msk.f32.vlgmr.msra.gmra.mxu1 %vm277_vm1, %v264_v6 }
  0x15   : > { %v323_v10 = vrot.slane %v322_v9, 2  ;;  %v319_v13 = vld [vmem:[%s261_s24] sm:$0x1] }
  0x16   : > { %274 = vperm.xlu0 %493, %v266_v8  }
  0x17   : > { %v324_v11 = vadd.f32 %v323_v10, %v322_v9 }
  0x19   : > { %v325_v12 = vrot.slane %v324_v11, 1 }
  0x1b   : > { %v326_v14 = vadd.f32 %v325_v12, %v324_v11 }
  0x1d   : > { %v327_v15 = vadd.f32 %v326_v14, %v319_v13 }
  0x1f   : > { %329 = vst.msk [vmem:[%s261_s24] sm:$0x1] %vm317_vm0, %v327_v15 }
  0x80   : > { %v270_v16 = vpop.permute.xlu0 %269 }
  0x88   : > { %v275_v17 = vpop.permute.xlu0 %274 }
  0x90   : > { %v304_v18 = vpop.f32.mrf.mxu0  ;;  %v307_v19 = vpop.f32.mrf.mxu1 }
  0x91   : > { %v305_v20 = vadd.f32 %v304_v18, %v270_v16  ;;  %v308_v21 = vadd.f32 %v307_v19, %v275_v17 }
  0x93   : > { %311 = vst.msk [vmem:[%s254_s11] sm:$0xff] %vm310_vm2, %v305_v20 }
  0x94   : > { %312 = vst.msk [vmem:[%s254_s11 + $0x8] sm:$0xff] %vm310_vm2, %v308_v21 }
  0x95 PF: > { %s15_s17 = sadd.s32 1, %s516_s17   ;;  %s605_s15 = smov %s512_s16 }
  0x96   : > { %p12_p5 = scmp.ge.s32.totalorder %s15_s17, 4   ;;  %s606_s16 = smov %s608_s18 }
  0x98   :  { %14 = sbr.rel (!%p12_p5) target bundleno = 2 (0x2), region = 78 }

</bundles_post_ra>
